<compile_context>
chip_gen: v6e
topology: v6e:2x2x1
jax: 0.10.0
libtpu: 0.0.40
codegen_flags: <defaults>
</compile_context>

<pallas_src>
import math

import jax
import jax.numpy as jnp
import numpy as np
from jax import lax
from jax.experimental import pallas as pl
from jax.experimental.pallas import tpu as pltpu

# ---------------------------------------------------------------------------
# Model hyper-parameters (small, consistent with the module's forward)
# ---------------------------------------------------------------------------
B, S, D = 2, 8, 32          # batch, sequence, model dim
H = 4                       # attention heads
DH = D // H                 # per-head dim
D_FF = 64                   # FFN hidden dim
N_LAYER = 2                 # number of encoder blocks
LN_EPS = 1e-5
BS = B * S                  # rows processed per kernel step


def _layer_norm(x, g, b, eps=LN_EPS):
    mu = jnp.mean(x, axis=-1, keepdims=True)
    var = jnp.mean((x - mu) ** 2, axis=-1, keepdims=True)
    return (x - mu) * jax.lax.rsqrt(var + eps) * g + b


# ---------------------------------------------------------------------------
# Fused whole-stack kernel: one grid step == one encoder layer.
# The f32 VMEM scratch `act_ref` carries the activation between layers.
# ---------------------------------------------------------------------------
def encoder_stack_kernel(x_ref, mask_ref, ln_ref,
                         wqkv_ref, bqkv_ref, wo_ref, bo_ref,
                         w1_ref, b1_ref, w2_ref, b2_ref,
                         o_ref, act_ref):
    layer = pl.program_id(0)

    # Layer 0: seed the resident activation scratch from the input.
    @pl.when(layer == 0)
    def _():
        act_ref[...] = x_ref[...].astype(jnp.float32)

    x = act_ref[...]                          # [BS, D]   carried activation (f32)
    mask = mask_ref[...]                      # [BS, BS]  additive (0 / -1e9)

    ln = ln_ref[0]                            # [4, D]
    ln1_g, ln1_b = ln[0:1], ln[1:2]           # [1, D]
    ln2_g, ln2_b = ln[2:3], ln[3:4]

    # ---- multi-head self-attention sub-layer (pre-LN) ----
    h = _layer_norm(x, ln1_g, ln1_b)
    qkv = jnp.dot(h, wqkv_ref[0],
                  preferred_element_type=jnp.float32) + bqkv_ref[0]  # [BS, 3D]
    q, k, v = qkv[:, :D], qkv[:, D:2 * D], qkv[:, 2 * D:]

    scale = 1.0 / math.sqrt(DH)
    trans_b = (((1,), (1,)), ((), ()))        # contract last dims: q @ k^T
    head_outs = []
    for hd in range(H):                       # static, unrolled over heads
        sl = slice(hd * DH, (hd + 1) * DH)
        s = lax.dot_general(q[:, sl], k[:, sl], dimension_numbers=trans_b,
                            preferred_element_type=jnp.float32)      # [BS, BS]
        s = s * scale + mask                  # additive mask (precomputed)
        s = s - jnp.max(s, axis=-1, keepdims=True)
        p = jnp.exp(s)
        p = p * pl.reciprocal(jnp.sum(p, axis=-1, keepdims=True), approx=True)
        head_outs.append(jnp.dot(p, v[:, sl],
                                 preferred_element_type=jnp.float32))
    ctx = jnp.concatenate(head_outs, axis=-1)                        # [BS, D]
    attn = jnp.dot(ctx, wo_ref[0],
                   preferred_element_type=jnp.float32) + bo_ref[0]
    x1 = x + attn

    # ---- feed-forward sub-layer (pre-LN) ----
    h2 = _layer_norm(x1, ln2_g, ln2_b)
    f = jnp.dot(h2, w1_ref[0], preferred_element_type=jnp.float32) + b1_ref[0]
    f = jnp.maximum(f, 0.0)
    f = jnp.dot(f, w2_ref[0], preferred_element_type=jnp.float32) + b2_ref[0]

    out = x1 + f
    act_ref[...] = out                        # carry to the next layer

    # Single HBM writeback: only the last layer touches the output block.
    @pl.when(layer == pl.num_programs(0) - 1)
    def _():
        o_ref[...] = out.astype(o_ref.dtype)


# ---------------------------------------------------------------------------
# Wrapper: one pallas_call for the whole encoder stack.
# ---------------------------------------------------------------------------
def encoder_forward(x, causal_mask, params):
    (ln, w_qkv, b_qkv, w_o, b_o, w1, b1, w2, b2) = params
    xf = x.reshape(BS, D)

    # Precompute the additive attention mask once, outside the kernel:
    # causal within each batch element, cross-batch blocks fully masked.
    allowed = (jnp.eye(B, dtype=bool)[:, None, :, None]
               & (causal_mask > 0.0)[None, :, None, :]).reshape(BS, BS)
    mask_bias = jnp.where(allowed, 0.0, -1e9).astype(jnp.float32)

    def layer_spec(arr):      # per-layer streamed slab (double-buffered)
        shp = arr.shape
        return pl.BlockSpec((1,) + shp[1:],
                            lambda l, _nd=len(shp): (l,) + (0,) * (_nd - 1))

    def resident_spec(arr):   # same block every step (stays in VMEM)
        shp = arr.shape
        return pl.BlockSpec(shp, lambda l, _nd=len(shp): (0,) * _nd)

    out = pl.pallas_call(
        encoder_stack_kernel,
        out_shape=jax.ShapeDtypeStruct((BS, D), x.dtype),
        grid_spec=pltpu.PrefetchScalarGridSpec(
            num_scalar_prefetch=0,
            grid=(N_LAYER,),
            in_specs=[resident_spec(xf), resident_spec(mask_bias),
                      layer_spec(ln),
                      layer_spec(w_qkv), layer_spec(b_qkv),
                      layer_spec(w_o), layer_spec(b_o),
                      layer_spec(w1), layer_spec(b1),
                      layer_spec(w2), layer_spec(b2)],
            out_specs=pl.BlockSpec((BS, D), lambda l: (0, 0)),
            scratch_shapes=[pltpu.VMEM((BS, D), jnp.float32)],
        ),
        compiler_params=pltpu.CompilerParams(
            dimension_semantics=("arbitrary",)),   # layers are sequential
    )(xf, mask_bias, ln, w_qkv, b_qkv, w_o, b_o, w1, b1, w2, b2)
    return out.reshape(B, S, D)


# ---------------------------------------------------------------------------
# Deterministic parameter init (stacked along the layer axis)
# ---------------------------------------------------------------------------
def init_stacked_params(key):
    ks = jax.random.split(key, 4)

    def lin(k, din, dout):
        w = jax.random.normal(k, (N_LAYER, din, dout), jnp.float32) * 0.02
        b = jnp.zeros((N_LAYER, 1, dout), jnp.float32)
        return w, b

    w_qkv, b_qkv = lin(ks[0], D, 3 * D)
    w_o, b_o = lin(ks[1], D, D)
    w1, b1 = lin(ks[2], D, D_FF)
    w2, b2 = lin(ks[3], D_FF, D)
    # ln[l] = [ln1_gamma, ln1_beta, ln2_gamma, ln2_beta]
    ln = jnp.stack([jnp.ones((N_LAYER, D), jnp.float32),
                    jnp.zeros((N_LAYER, D), jnp.float32),
                    jnp.ones((N_LAYER, D), jnp.float32),
                    jnp.zeros((N_LAYER, D), jnp.float32)], axis=1)
    return (ln, w_qkv, b_qkv, w_o, b_o, w1, b1, w2, b2)


# ---------------------------------------------------------------------------
# Pure-JAX reference (same math, no Pallas) for a correctness check
# ---------------------------------------------------------------------------
def encoder_ref(x, causal_mask, params):
    (ln, w_qkv, b_qkv, w_o, b_o, w1, b1, w2, b2) = params
    out = x
    for l in range(N_LAYER):
        ln1_g, ln1_b, ln2_g, ln2_b = ln[l, 0], ln[l, 1], ln[l, 2], ln[l, 3]
        h = _layer_norm(out, ln1_g, ln1_b)
        qkv = h @ w_qkv[l] + b_qkv[l]
        q, k, v = qkv[..., :D], qkv[..., D:2 * D], qkv[..., 2 * D:]
        qh = q.reshape(B, S, H, DH).transpose(0, 2, 1, 3)
        kh = k.reshape(B, S, H, DH).transpose(0, 2, 1, 3)
        vh = v.reshape(B, S, H, DH).transpose(0, 2, 1, 3)
        s = jnp.einsum('bhqd,bhkd->bhqk', qh, kh) / math.sqrt(DH)
        s = jnp.where(causal_mask[None, None] > 0.0, s, -1e9)
        p = jax.nn.softmax(s, axis=-1)
        a = jnp.einsum('bhqk,bhkd->bhqd', p, vh)
        a = a.transpose(0, 2, 1, 3).reshape(B, S, D)
        x1 = out + (a @ w_o[l] + b_o[l])
        h2 = _layer_norm(x1, ln2_g, ln2_b)
        f = jnp.maximum(h2 @ w1[l] + b1[l], 0.0) @ w2[l] + b2[l]
        out = x1 + f
    return out


# ---------------------------------------------------------------------------
if __name__ == "__main__":
    key = jax.random.PRNGKey(0)
    kx, kp = jax.random.split(key)

    x = jax.random.normal(kx, (B, S, D), jnp.float32)
    causal_mask = jnp.tril(jnp.ones((S, S), jnp.float32))   # 1.0 = attend

    params = init_stacked_params(kp)

    out = encoder_forward(x, causal_mask, params)
    out = jax.block_until_ready(out)

    ref = encoder_ref(x, causal_mask, params)
    np.testing.assert_allclose(np.asarray(out), np.asarray(ref),
                               rtol=1e-2, atol=1e-2)

    print("KERNEL_OK")
</pallas_src>

<mosaic_0001>
module attributes {stable_mosaic.version = 11 : i64} {
  func.func @encoder_stack_kernel(%arg0: i32, %arg1: memref<16x32xf32, #tpu.memory_space<vmem>>, %arg2: memref<16x16xf32, #tpu.memory_space<vmem>>, %arg3: memref<1x4x32xf32, #tpu.memory_space<vmem>>, %arg4: memref<1x32x96xf32, #tpu.memory_space<vmem>>, %arg5: memref<1x1x96xf32, #tpu.memory_space<vmem>>, %arg6: memref<1x32x32xf32, #tpu.memory_space<vmem>>, %arg7: memref<1x1x32xf32, #tpu.memory_space<vmem>>, %arg8: memref<1x32x64xf32, #tpu.memory_space<vmem>>, %arg9: memref<1x1x64xf32, #tpu.memory_space<vmem>>, %arg10: memref<1x64x32xf32, #tpu.memory_space<vmem>>, %arg11: memref<1x1x32xf32, #tpu.memory_space<vmem>>, %arg12: memref<16x32xf32, #tpu.memory_space<vmem>>, %arg13: memref<16x32xf32, #tpu.memory_space<vmem>>) attributes {dimension_semantics = [#tpu.dimension_semantics<arbitrary>], iteration_bounds = array<i64: 2>, scalar_prefetch = 0 : i64, scratch_operands = 1 : i64, tpu.core_type = #tpu.core_type<tc>, window_params = [{pipeline_mode = #tpu.pipeline_mode<synchronous>, transform_indices = @transform_0, window_bounds = array<i64: 16, 32>}, {pipeline_mode = #tpu.pipeline_mode<synchronous>, transform_indices = @transform_1, window_bounds = array<i64: 16, 16>}, {transform_indices = @transform_2, window_bounds = array<i64: 1, 4, 32>}, {transform_indices = @transform_3, window_bounds = array<i64: 1, 32, 96>}, {transform_indices = @transform_4, window_bounds = array<i64: 1, 1, 96>}, {transform_indices = @transform_5, window_bounds = array<i64: 1, 32, 32>}, {transform_indices = @transform_6, window_bounds = array<i64: 1, 1, 32>}, {transform_indices = @transform_7, window_bounds = array<i64: 1, 32, 64>}, {transform_indices = @transform_8, window_bounds = array<i64: 1, 1, 64>}, {transform_indices = @transform_9, window_bounds = array<i64: 1, 64, 32>}, {transform_indices = @transform_10, window_bounds = array<i64: 1, 1, 32>}, {pipeline_mode = #tpu.pipeline_mode<synchronous>, transform_indices = @transform_11, window_bounds = array<i64: 16, 32>}]} {
    %c0_i32 = arith.constant 0 : i32
    %0 = arith.cmpi eq, %arg0, %c0_i32 : i32
    %1 = arith.extui %0 : i1 to i32
    %c0_i32_0 = arith.constant 0 : i32
    %2 = arith.cmpi ne, %1, %c0_i32_0 : i32
    scf.if %2 {
      %c0_68 = arith.constant 0 : index
      %c0_69 = arith.constant 0 : index
      %167 = vector.load %arg1[%c0_68, %c0_69] : memref<16x32xf32, #tpu.memory_space<vmem>>, vector<16x32xf32>
      %c0_70 = arith.constant 0 : index
      %c0_71 = arith.constant 0 : index
      %168 = vector.load %arg13[%c0_70, %c0_71] : memref<16x32xf32, #tpu.memory_space<vmem>>, vector<16x32xf32>
      tpu.vector_store %arg13[%c0_70, %c0_71], %167 {strides = array<i32>} : memref<16x32xf32, #tpu.memory_space<vmem>>, vector<16x32xf32>,
    } else {
    }
    %c0 = arith.constant 0 : index
    %c0_1 = arith.constant 0 : index
    %3 = vector.load %arg13[%c0, %c0_1] : memref<16x32xf32, #tpu.memory_space<vmem>>, vector<16x32xf32>
    %c0_2 = arith.constant 0 : index
    %c0_3 = arith.constant 0 : index
    %4 = vector.load %arg2[%c0_2, %c0_3] : memref<16x16xf32, #tpu.memory_space<vmem>>, vector<16x16xf32>
    %c0_4 = arith.constant 0 : index
    %c0_5 = arith.constant 0 : index
    %c0_6 = arith.constant 0 : index
    %5 = vector.load %arg3[%c0_4, %c0_5, %c0_6] : memref<1x4x32xf32, #tpu.memory_space<vmem>>, vector<1x4x32xf32>
    %6 = vector.shape_cast %5 : vector<1x4x32xf32> to vector<4x32xf32>
    %7 = vector.extract_strided_slice %6 {offsets = [0, 0], sizes = [1, 32], strides = [1, 1]} : vector<4x32xf32> to vector<1x32xf32>
    %8 = vector.extract_strided_slice %6 {offsets = [1, 0], sizes = [1, 32], strides = [1, 1]} : vector<4x32xf32> to vector<1x32xf32>
    %9 = vector.extract_strided_slice %6 {offsets = [2, 0], sizes = [1, 32], strides = [1, 1]} : vector<4x32xf32> to vector<1x32xf32>
    %10 = vector.extract_strided_slice %6 {offsets = [3, 0], sizes = [1, 32], strides = [1, 1]} : vector<4x32xf32> to vector<1x32xf32>
    %cst = arith.constant dense<0.000000e+00> : vector<16xf32>
    %11 = vector.multi_reduction <add>, %3, %cst [1] : vector<16x32xf32> to vector<16xf32>
    %12 = vector.shape_cast %11 : vector<16xf32> to vector<16x1xf32>
    %cst_7 = arith.constant 3.200000e+01 : f32
    %13 = vector.broadcast %cst_7 : f32 to vector<16x1xf32>
    %14 = arith.divf %12, %13 : vector<16x1xf32>
    %15 = vector.broadcast %14 : vector<16x1xf32> to vector<16x32xf32>
    %16 = arith.subf %3, %15 : vector<16x32xf32>
    %17 = arith.mulf %16, %16 : vector<16x32xf32>
    %cst_8 = arith.constant dense<0.000000e+00> : vector<16xf32>
    %18 = vector.multi_reduction <add>, %17, %cst_8 [1] : vector<16x32xf32> to vector<16xf32>
    %19 = vector.shape_cast %18 : vector<16xf32> to vector<16x1xf32>
    %cst_9 = arith.constant 3.200000e+01 : f32
    %20 = vector.broadcast %cst_9 : f32 to vector<16x1xf32>
    %21 = arith.divf %19, %20 : vector<16x1xf32>
    %22 = vector.broadcast %14 : vector<16x1xf32> to vector<16x32xf32>
    %23 = arith.subf %3, %22 : vector<16x32xf32>
    %cst_10 = arith.constant 9.99999974E-6 : f32
    %24 = vector.broadcast %cst_10 : f32 to vector<16x1xf32>
    %25 = arith.addf %21, %24 : vector<16x1xf32>
    %26 = math.rsqrt %25 : vector<16x1xf32>
    %27 = vector.broadcast %26 : vector<16x1xf32> to vector<16x32xf32>
    %28 = arith.mulf %23, %27 : vector<16x32xf32>
    %29 = vector.broadcast %7 : vector<1x32xf32> to vector<16x32xf32>
    %30 = arith.mulf %28, %29 : vector<16x32xf32>
    %31 = vector.broadcast %8 : vector<1x32xf32> to vector<16x32xf32>
    %32 = arith.addf %30, %31 : vector<16x32xf32>
    %c0_11 = arith.constant 0 : index
    %c0_12 = arith.constant 0 : index
    %c0_13 = arith.constant 0 : index
    %33 = vector.load %arg4[%c0_11, %c0_12, %c0_13] : memref<1x32x96xf32, #tpu.memory_space<vmem>>, vector<1x32x96xf32>
    %34 = vector.shape_cast %33 : vector<1x32x96xf32> to vector<32x96xf32>
    %cst_14 = arith.constant dense<0.000000e+00> : vector<16x96xf32>
    %35 = tpu.matmul %32, %34, %cst_14 {dimension_numbers = #tpu.dot_dimension_numbers<[1], [0], [0], [1], [0, 0, 1, 1], [], []>} : vector<16x32xf32>, vector<32x96xf32>, vector<16x96xf32> -> vector<16x96xf32>
    %c0_15 = arith.constant 0 : index
    %c0_16 = arith.constant 0 : index
    %c0_17 = arith.constant 0 : index
    %36 = vector.load %arg5[%c0_15, %c0_16, %c0_17] : memref<1x1x96xf32, #tpu.memory_space<vmem>>, vector<1x1x96xf32>
    %37 = vector.shape_cast %36 : vector<1x1x96xf32> to vector<1x96xf32>
    %38 = vector.broadcast %37 : vector<1x96xf32> to vector<16x96xf32>
    %39 = arith.addf %35, %38 : vector<16x96xf32>
    %40 = vector.extract_strided_slice %39 {offsets = [0, 0], sizes = [16, 32], strides = [1, 1]} : vector<16x96xf32> to vector<16x32xf32>
    %41 = vector.extract_strided_slice %39 {offsets = [0, 32], sizes = [16, 32], strides = [1, 1]} : vector<16x96xf32> to vector<16x32xf32>
    %42 = vector.extract_strided_slice %39 {offsets = [0, 64], sizes = [16, 32], strides = [1, 1]} : vector<16x96xf32> to vector<16x32xf32>
    %43 = vector.extract_strided_slice %40 {offsets = [0, 0], sizes = [16, 8], strides = [1, 1]} : vector<16x32xf32> to vector<16x8xf32>
    %44 = vector.extract_strided_slice %41 {offsets = [0, 0], sizes = [16, 8], strides = [1, 1]} : vector<16x32xf32> to vector<16x8xf32>
    %cst_18 = arith.constant dense<0.000000e+00> : vector<16x16xf32>
    %45 = tpu.matmul %43, %44, %cst_18 {dimension_numbers = #tpu.dot_dimension_numbers<[1], [1], [0], [0], [0, 0, 1, 0], [], []>} : vector<16x8xf32>, vector<16x8xf32>, vector<16x16xf32> -> vector<16x16xf32>
    %cst_19 = arith.constant 0.353553385 : f32
    %46 = vector.broadcast %cst_19 : f32 to vector<16x16xf32>
    %47 = arith.mulf %45, %46 : vector<16x16xf32>
    %48 = arith.addf %47, %4 : vector<16x16xf32>
    %cst_20 = arith.constant dense<0xFF800000> : vector<16xf32>
    %49 = vector.multi_reduction <maximumf>, %48, %cst_20 [1] : vector<16x16xf32> to vector<16xf32>
    %50 = vector.shape_cast %49 : vector<16xf32> to vector<16x1xf32>
    %51 = vector.broadcast %50 : vector<16x1xf32> to vector<16x16xf32>
    %52 = arith.subf %48, %51 : vector<16x16xf32>
    %53 = math.exp %52 : vector<16x16xf32>
    %cst_21 = arith.constant dense<0.000000e+00> : vector<16xf32>
    %54 = vector.multi_reduction <add>, %53, %cst_21 [1] : vector<16x16xf32> to vector<16xf32>
    %55 = vector.shape_cast %54 : vector<16xf32> to vector<16x1xf32>
    %56 = tpu.reciprocal %55 {approx = true} : vector<16x1xf32> -> vector<16x1xf32>
    %57 = vector.broadcast %56 : vector<16x1xf32> to vector<16x16xf32>
    %58 = arith.mulf %53, %57 : vector<16x16xf32>
    %59 = vector.extract_strided_slice %42 {offsets = [0, 0], sizes = [16, 8], strides = [1, 1]} : vector<16x32xf32> to vector<16x8xf32>
    %cst_22 = arith.constant dense<0.000000e+00> : vector<16x8xf32>
    %60 = tpu.matmul %58, %59, %cst_22 {dimension_numbers = #tpu.dot_dimension_numbers<[1], [0], [0], [1], [0, 0, 1, 1], [], []>} : vector<16x16xf32>, vector<16x8xf32>, vector<16x8xf32> -> vector<16x8xf32>
    %61 = vector.extract_strided_slice %40 {offsets = [0, 8], sizes = [16, 8], strides = [1, 1]} : vector<16x32xf32> to vector<16x8xf32>
    %62 = vector.extract_strided_slice %41 {offsets = [0, 8], sizes = [16, 8], strides = [1, 1]} : vector<16x32xf32> to vector<16x8xf32>
    %cst_23 = arith.constant dense<0.000000e+00> : vector<16x16xf32>
    %63 = tpu.matmul %61, %62, %cst_23 {dimension_numbers = #tpu.dot_dimension_numbers<[1], [1], [0], [0], [0, 0, 1, 0], [], []>} : vector<16x8xf32>, vector<16x8xf32>, vector<16x16xf32> -> vector<16x16xf32>
    %cst_24 = arith.constant 0.353553385 : f32
    %64 = vector.broadcast %cst_24 : f32 to vector<16x16xf32>
    %65 = arith.mulf %63, %64 : vector<16x16xf32>
    %66 = arith.addf %65, %4 : vector<16x16xf32>
    %cst_25 = arith.constant dense<0xFF800000> : vector<16xf32>
    %67 = vector.multi_reduction <maximumf>, %66, %cst_25 [1] : vector<16x16xf32> to vector<16xf32>
    %68 = vector.shape_cast %67 : vector<16xf32> to vector<16x1xf32>
    %69 = vector.broadcast %68 : vector<16x1xf32> to vector<16x16xf32>
    %70 = arith.subf %66, %69 : vector<16x16xf32>
    %71 = math.exp %70 : vector<16x16xf32>
    %cst_26 = arith.constant dense<0.000000e+00> : vector<16xf32>
    %72 = vector.multi_reduction <add>, %71, %cst_26 [1] : vector<16x16xf32> to vector<16xf32>
    %73 = vector.shape_cast %72 : vector<16xf32> to vector<16x1xf32>
    %74 = tpu.reciprocal %73 {approx = true} : vector<16x1xf32> -> vector<16x1xf32>
    %75 = vector.broadcast %74 : vector<16x1xf32> to vector<16x16xf32>
    %76 = arith.mulf %71, %75 : vector<16x16xf32>
    %77 = vector.extract_strided_slice %42 {offsets = [0, 8], sizes = [16, 8], strides = [1, 1]} : vector<16x32xf32> to vector<16x8xf32>
    %cst_27 = arith.constant dense<0.000000e+00> : vector<16x8xf32>
    %78 = tpu.matmul %76, %77, %cst_27 {dimension_numbers = #tpu.dot_dimension_numbers<[1], [0], [0], [1], [0, 0, 1, 1], [], []>} : vector<16x16xf32>, vector<16x8xf32>, vector<16x8xf32> -> vector<16x8xf32>
    %79 = vector.extract_strided_slice %40 {offsets = [0, 16], sizes = [16, 8], strides = [1, 1]} : vector<16x32xf32> to vector<16x8xf32>
    %80 = vector.extract_strided_slice %41 {offsets = [0, 16], sizes = [16, 8], strides = [1, 1]} : vector<16x32xf32> to vector<16x8xf32>
    %cst_28 = arith.constant dense<0.000000e+00> : vector<16x16xf32>
    %81 = tpu.matmul %79, %80, %cst_28 {dimension_numbers = #tpu.dot_dimension_numbers<[1], [1], [0], [0], [0, 0, 1, 0], [], []>} : vector<16x8xf32>, vector<16x8xf32>, vector<16x16xf32> -> vector<16x16xf32>
    %cst_29 = arith.constant 0.353553385 : f32
    %82 = vector.broadcast %cst_29 : f32 to vector<16x16xf32>
    %83 = arith.mulf %81, %82 : vector<16x16xf32>
    %84 = arith.addf %83, %4 : vector<16x16xf32>
    %cst_30 = arith.constant dense<0xFF800000> : vector<16xf32>
    %85 = vector.multi_reduction <maximumf>, %84, %cst_30 [1] : vector<16x16xf32> to vector<16xf32>
    %86 = vector.shape_cast %85 : vector<16xf32> to vector<16x1xf32>
    %87 = vector.broadcast %86 : vector<16x1xf32> to vector<16x16xf32>
    %88 = arith.subf %84, %87 : vector<16x16xf32>
    %89 = math.exp %88 : vector<16x16xf32>
    %cst_31 = arith.constant dense<0.000000e+00> : vector<16xf32>
    %90 = vector.multi_reduction <add>, %89, %cst_31 [1] : vector<16x16xf32> to vector<16xf32>
    %91 = vector.shape_cast %90 : vector<16xf32> to vector<16x1xf32>
    %92 = tpu.reciprocal %91 {approx = true} : vector<16x1xf32> -> vector<16x1xf32>
    %93 = vector.broadcast %92 : vector<16x1xf32> to vector<16x16xf32>
    %94 = arith.mulf %89, %93 : vector<16x16xf32>
    %95 = vector.extract_strided_slice %42 {offsets = [0, 16], sizes = [16, 8], strides = [1, 1]} : vector<16x32xf32> to vector<16x8xf32>
    %cst_32 = arith.constant dense<0.000000e+00> : vector<16x8xf32>
    %96 = tpu.matmul %94, %95, %cst_32 {dimension_numbers = #tpu.dot_dimension_numbers<[1], [0], [0], [1], [0, 0, 1, 1], [], []>} : vector<16x16xf32>, vector<16x8xf32>, vector<16x8xf32> -> vector<16x8xf32>
    %97 = vector.extract_strided_slice %40 {offsets = [0, 24], sizes = [16, 8], strides = [1, 1]} : vector<16x32xf32> to vector<16x8xf32>
    %98 = vector.extract_strided_slice %41 {offsets = [0, 24], sizes = [16, 8], strides = [1, 1]} : vector<16x32xf32> to vector<16x8xf32>
    %cst_33 = arith.constant dense<0.000000e+00> : vector<16x16xf32>
    %99 = tpu.matmul %97, %98, %cst_33 {dimension_numbers = #tpu.dot_dimension_numbers<[1], [1], [0], [0], [0, 0, 1, 0], [], []>} : vector<16x8xf32>, vector<16x8xf32>, vector<16x16xf32> -> vector<16x16xf32>
    %cst_34 = arith.constant 0.353553385 : f32
    %100 = vector.broadcast %cst_34 : f32 to vector<16x16xf32>
    %101 = arith.mulf %99, %100 : vector<16x16xf32>
    %102 = arith.addf %101, %4 : vector<16x16xf32>
    %cst_35 = arith.constant dense<0xFF800000> : vector<16xf32>
    %103 = vector.multi_reduction <maximumf>, %102, %cst_35 [1] : vector<16x16xf32> to vector<16xf32>
    %104 = vector.shape_cast %103 : vector<16xf32> to vector<16x1xf32>
    %105 = vector.broadcast %104 : vector<16x1xf32> to vector<16x16xf32>
    %106 = arith.subf %102, %105 : vector<16x16xf32>
    %107 = math.exp %106 : vector<16x16xf32>
    %cst_36 = arith.constant dense<0.000000e+00> : vector<16xf32>
    %108 = vector.multi_reduction <add>, %107, %cst_36 [1] : vector<16x16xf32> to vector<16xf32>
    %109 = vector.shape_cast %108 : vector<16xf32> to vector<16x1xf32>
    %110 = tpu.reciprocal %109 {approx = true} : vector<16x1xf32> -> vector<16x1xf32>
    %111 = vector.broadcast %110 : vector<16x1xf32> to vector<16x16xf32>
    %112 = arith.mulf %107, %111 : vector<16x16xf32>
    %113 = vector.extract_strided_slice %42 {offsets = [0, 24], sizes = [16, 8], strides = [1, 1]} : vector<16x32xf32> to vector<16x8xf32>
    %cst_37 = arith.constant dense<0.000000e+00> : vector<16x8xf32>
    %114 = tpu.matmul %112, %113, %cst_37 {dimension_numbers = #tpu.dot_dimension_numbers<[1], [0], [0], [1], [0, 0, 1, 1], [], []>} : vector<16x16xf32>, vector<16x8xf32>, vector<16x8xf32> -> vector<16x8xf32>
    %115 = tpu.concatenate %60, %78, %96, %114 in 1 : vector<16x8xf32>, vector<16x8xf32>, vector<16x8xf32>, vector<16x8xf32> -> vector<16x32xf32>
    %c0_38 = arith.constant 0 : index
    %c0_39 = arith.constant 0 : index
    %c0_40 = arith.constant 0 : index
    %116 = vector.load %arg6[%c0_38, %c0_39, %c0_40] : memref<1x32x32xf32, #tpu.memory_space<vmem>>, vector<1x32x32xf32>
    %117 = vector.shape_cast %116 : vector<1x32x32xf32> to vector<32x32xf32>
    %cst_41 = arith.constant dense<0.000000e+00> : vector<16x32xf32>
    %118 = tpu.matmul %115, %117, %cst_41 {dimension_numbers = #tpu.dot_dimension_numbers<[1], [0], [0], [1], [0, 0, 1, 1], [], []>} : vector<16x32xf32>, vector<32x32xf32>, vector<16x32xf32> -> vector<16x32xf32>
    %c0_42 = arith.constant 0 : index
    %c0_43 = arith.constant 0 : index
    %c0_44 = arith.constant 0 : index
    %119 = vector.load %arg7[%c0_42, %c0_43, %c0_44] : memref<1x1x32xf32, #tpu.memory_space<vmem>>, vector<1x1x32xf32>
    %120 = vector.shape_cast %119 : vector<1x1x32xf32> to vector<1x32xf32>
    %121 = vector.broadcast %120 : vector<1x32xf32> to vector<16x32xf32>
    %122 = arith.addf %118, %121 : vector<16x32xf32>
    %123 = arith.addf %3, %122 : vector<16x32xf32>
    %cst_45 = arith.constant dense<0.000000e+00> : vector<16xf32>
    %124 = vector.multi_reduction <add>, %123, %cst_45 [1] : vector<16x32xf32> to vector<16xf32>
    %125 = vector.shape_cast %124 : vector<16xf32> to vector<16x1xf32>
    %cst_46 = arith.constant 3.200000e+01 : f32
    %126 = vector.broadcast %cst_46 : f32 to vector<16x1xf32>
    %127 = arith.divf %125, %126 : vector<16x1xf32>
    %128 = vector.broadcast %127 : vector<16x1xf32> to vector<16x32xf32>
    %129 = arith.subf %123, %128 : vector<16x32xf32>
    %130 = arith.mulf %129, %129 : vector<16x32xf32>
    %cst_47 = arith.constant dense<0.000000e+00> : vector<16xf32>
    %131 = vector.multi_reduction <add>, %130, %cst_47 [1] : vector<16x32xf32> to vector<16xf32>
    %132 = vector.shape_cast %131 : vector<16xf32> to vector<16x1xf32>
    %cst_48 = arith.constant 3.200000e+01 : f32
    %133 = vector.broadcast %cst_48 : f32 to vector<16x1xf32>
    %134 = arith.divf %132, %133 : vector<16x1xf32>
    %135 = vector.broadcast %127 : vector<16x1xf32> to vector<16x32xf32>
    %136 = arith.subf %123, %135 : vector<16x32xf32>
    %cst_49 = arith.constant 9.99999974E-6 : f32
    %137 = vector.broadcast %cst_49 : f32 to vector<16x1xf32>
    %138 = arith.addf %134, %137 : vector<16x1xf32>
    %139 = math.rsqrt %138 : vector<16x1xf32>
    %140 = vector.broadcast %139 : vector<16x1xf32> to vector<16x32xf32>
    %141 = arith.mulf %136, %140 : vector<16x32xf32>
    %142 = vector.broadcast %9 : vector<1x32xf32> to vector<16x32xf32>
    %143 = arith.mulf %141, %142 : vector<16x32xf32>
    %144 = vector.broadcast %10 : vector<1x32xf32> to vector<16x32xf32>
    %145 = arith.addf %143, %144 : vector<16x32xf32>
    %c0_50 = arith.constant 0 : index
    %c0_51 = arith.constant 0 : index
    %c0_52 = arith.constant 0 : index
    %146 = vector.load %arg8[%c0_50, %c0_51, %c0_52] : memref<1x32x64xf32, #tpu.memory_space<vmem>>, vector<1x32x64xf32>
    %147 = vector.shape_cast %146 : vector<1x32x64xf32> to vector<32x64xf32>
    %cst_53 = arith.constant dense<0.000000e+00> : vector<16x64xf32>
    %148 = tpu.matmul %145, %147, %cst_53 {dimension_numbers = #tpu.dot_dimension_numbers<[1], [0], [0], [1], [0, 0, 1, 1], [], []>} : vector<16x32xf32>, vector<32x64xf32>, vector<16x64xf32> -> vector<16x64xf32>
    %c0_54 = arith.constant 0 : index
    %c0_55 = arith.constant 0 : index
    %c0_56 = arith.constant 0 : index
    %149 = vector.load %arg9[%c0_54, %c0_55, %c0_56] : memref<1x1x64xf32, #tpu.memory_space<vmem>>, vector<1x1x64xf32>
    %150 = vector.shape_cast %149 : vector<1x1x64xf32> to vector<1x64xf32>
    %151 = vector.broadcast %150 : vector<1x64xf32> to vector<16x64xf32>
    %152 = arith.addf %148, %151 : vector<16x64xf32>
    %cst_57 = arith.constant 0.000000e+00 : f32
    %153 = vector.broadcast %cst_57 : f32 to vector<16x64xf32>
    %154 = arith.maximumf %152, %153 : vector<16x64xf32>
    %c0_58 = arith.constant 0 : index
    %c0_59 = arith.constant 0 : index
    %c0_60 = arith.constant 0 : index
    %155 = vector.load %arg10[%c0_58, %c0_59, %c0_60] : memref<1x64x32xf32, #tpu.memory_space<vmem>>, vector<1x64x32xf32>
    %156 = vector.shape_cast %155 : vector<1x64x32xf32> to vector<64x32xf32>
    %cst_61 = arith.constant dense<0.000000e+00> : vector<16x32xf32>
    %157 = tpu.matmul %154, %156, %cst_61 {dimension_numbers = #tpu.dot_dimension_numbers<[1], [0], [0], [1], [0, 0, 1, 1], [], []>} : vector<16x64xf32>, vector<64x32xf32>, vector<16x32xf32> -> vector<16x32xf32>
    %c0_62 = arith.constant 0 : index
    %c0_63 = arith.constant 0 : index
    %c0_64 = arith.constant 0 : index
    %158 = vector.load %arg11[%c0_62, %c0_63, %c0_64] : memref<1x1x32xf32, #tpu.memory_space<vmem>>, vector<1x1x32xf32>
    %159 = vector.shape_cast %158 : vector<1x1x32xf32> to vector<1x32xf32>
    %160 = vector.broadcast %159 : vector<1x32xf32> to vector<16x32xf32>
    %161 = arith.addf %157, %160 : vector<16x32xf32>
    %162 = arith.addf %123, %161 : vector<16x32xf32>
    %c0_65 = arith.constant 0 : index
    %c0_66 = arith.constant 0 : index
    %163 = vector.load %arg13[%c0_65, %c0_66] : memref<16x32xf32, #tpu.memory_space<vmem>>, vector<16x32xf32>
    tpu.vector_store %arg13[%c0_65, %c0_66], %162 {strides = array<i32>} : memref<16x32xf32, #tpu.memory_space<vmem>>, vector<16x32xf32>,
    %c1_i32 = arith.constant 1 : i32
    %164 = arith.cmpi eq, %arg0, %c1_i32 : i32
    %165 = arith.extui %164 : i1 to i32
    %c0_i32_67 = arith.constant 0 : i32
    %166 = arith.cmpi ne, %165, %c0_i32_67 : i32
    scf.if %166 {
      %c0_68 = arith.constant 0 : index
      %c0_69 = arith.constant 0 : index
      %167 = vector.load %arg12[%c0_68, %c0_69] : memref<16x32xf32, #tpu.memory_space<vmem>>, vector<16x32xf32>
      tpu.vector_store %arg12[%c0_68, %c0_69], %162 {strides = array<i32>} : memref<16x32xf32, #tpu.memory_space<vmem>>, vector<16x32xf32>,
    } else {
    }
    return
  }
  func.func @transform_0(%arg0: i32) -> (i32, i32) {
    %c0_i32 = arith.constant 0 : i32
    %c0_i32_0 = arith.constant 0 : i32
    %c0_i32_1 = arith.constant 0 : i32
    return %c0_i32, %c0_i32_0 : i32, i32
  }
  func.func @transform_1(%arg0: i32) -> (i32, i32) {
    %c0_i32 = arith.constant 0 : i32
    %c0_i32_0 = arith.constant 0 : i32
    %c0_i32_1 = arith.constant 0 : i32
    return %c0_i32, %c0_i32_0 : i32, i32
  }
  func.func @transform_2(%arg0: i32) -> (i32, i32, i32) {
    %c0_i32 = arith.constant 0 : i32
    %c0_i32_0 = arith.constant 0 : i32
    %c0_i32_1 = arith.constant 0 : i32
    return %arg0, %c0_i32, %c0_i32_0 : i32, i32, i32
  }
  func.func @transform_3(%arg0: i32) -> (i32, i32, i32) {
    %c0_i32 = arith.constant 0 : i32
    %c0_i32_0 = arith.constant 0 : i32
    %c0_i32_1 = arith.constant 0 : i32
    return %arg0, %c0_i32, %c0_i32_0 : i32, i32, i32
  }
  func.func @transform_4(%arg0: i32) -> (i32, i32, i32) {
    %c0_i32 = arith.constant 0 : i32
    %c0_i32_0 = arith.constant 0 : i32
    %c0_i32_1 = arith.constant 0 : i32
    return %arg0, %c0_i32, %c0_i32_0 : i32, i32, i32
  }
  func.func @transform_5(%arg0: i32) -> (i32, i32, i32) {
    %c0_i32 = arith.constant 0 : i32
    %c0_i32_0 = arith.constant 0 : i32
    %c0_i32_1 = arith.constant 0 : i32
    return %arg0, %c0_i32, %c0_i32_0 : i32, i32, i32
  }
  func.func @transform_6(%arg0: i32) -> (i32, i32, i32) {
    %c0_i32 = arith.constant 0 : i32
    %c0_i32_0 = arith.constant 0 : i32
    %c0_i32_1 = arith.constant 0 : i32
    return %arg0, %c0_i32, %c0_i32_0 : i32, i32, i32
  }
  func.func @transform_7(%arg0: i32) -> (i32, i32, i32) {
    %c0_i32 = arith.constant 0 : i32
    %c0_i32_0 = arith.constant 0 : i32
    %c0_i32_1 = arith.constant 0 : i32
    return %arg0, %c0_i32, %c0_i32_0 : i32, i32, i32
  }
  func.func @transform_8(%arg0: i32) -> (i32, i32, i32) {
    %c0_i32 = arith.constant 0 : i32
    %c0_i32_0 = arith.constant 0 : i32
    %c0_i32_1 = arith.constant 0 : i32
    return %arg0, %c0_i32, %c0_i32_0 : i32, i32, i32
  }
  func.func @transform_9(%arg0: i32) -> (i32, i32, i32) {
    %c0_i32 = arith.constant 0 : i32
    %c0_i32_0 = arith.constant 0 : i32
    %c0_i32_1 = arith.constant 0 : i32
    return %arg0, %c0_i32, %c0_i32_0 : i32, i32, i32
  }
  func.func @transform_10(%arg0: i32) -> (i32, i32, i32) {
    %c0_i32 = arith.constant 0 : i32
    %c0_i32_0 = arith.constant 0 : i32
    %c0_i32_1 = arith.constant 0 : i32
    return %arg0, %c0_i32, %c0_i32_0 : i32, i32, i32
  }
  func.func @transform_11(%arg0: i32) -> (i32, i32) {
    %c0_i32 = arith.constant 0 : i32
    %c0_i32_0 = arith.constant 0 : i32
    %c0_i32_1 = arith.constant 0 : i32
    return %c0_i32, %c0_i32_0 : i32, i32
  }
}

</mosaic_0001>

<bundles_post_ra>
// kernel: tpu_custom_call.1
= control target key start
LH: loop header
LB: loop body
LE: loop exit
PB: predicated region body
PF: predicated region fallthrough
CT: control target
= control target key end

     0   :  { %s3020_s0 = inlined_call_operand.hbm [shape: f32[16,32], index: 0, kind: input, shape index: {}]   ;;  %s3021_s1 = inlined_call_operand.hbm [shape: f32[16,16], index: 1, kind: input, shape index: {}]   ;;  %s3022_s2 = inlined_call_operand.hbm [shape: f32[2,4,32], index: 2, kind: input, shape index: {}]   ;;  %s3023_s3 = inlined_call_operand.vmem [shape: f32[2,32,96], index: 3, kind: input, shape index: {}]   ;;  %s3024_s4 = inlined_call_operand.vmem [shape: f32[2,1,96], index: 4, kind: input, shape index: {}]   ;;  %s3025_s5 = inlined_call_operand.vmem [shape: f32[2,32,32], index: 5, kind: input, shape index: {}]   ;;  %s3026_s6 = inlined_call_operand.vmem [shape: f32[2,1,32], index: 6, kind: input, shape index: {}]   ;;  %s3027_s7 = inlined_call_operand.vmem [shape: f32[2,32,64], index: 7, kind: input, shape index: {}]   ;;  %s3028_s8 = inlined_call_operand.vmem [shape: f32[2,1,64], index: 8, kind: input, shape index: {}]   ;;  %s3029_s9 = inlined_call_operand.vmem [shape: f32[2,64,32], index: 9, kind: input, shape index: {}]   ;;  %s3030_s10 = inlined_call_operand.vmem [shape: f32[2,1,32], index: 10, kind: input, shape index: {}]   ;;  %s3031_s11 = inlined_call_operand.hbm [shape: f32[16,32], index: 11, kind: output, shape index: {}]  }
   0x1   :  { %3035 = sst [smem:[#allocation15_spill]] %s3020_s0 }
   0x2   :  { %3036 = sst [smem:[#allocation16_spill]] %s3021_s1 }
   0x3   :  { %3037 = sst [smem:[#allocation17_spill]] %s3022_s2 }
   0x4   :  { %3038 = sst [smem:[#allocation18_spill]] %s3023_s3 }
   0x5   :  { %3039 = sst [smem:[#allocation19_spill]] %s3025_s5 }
   0x6   :  { %16 = vsyncpa [#allocation4], 0 }
   0x7   :  { %17 = vsyncpa [#allocation7], 0 }
   0x8   :  { %18 = vsyncpa [#allocation5], 0  ;;  %s2631_s17 = smov 0   ;;  %s2633_s18 = smov 0  }
   0x9   :  { %s2635_s19 = smov 0   ;;  %s2637_s20 = smov 0  }
   0xa LB: > { %s2650_s21 = sadd.s32 4294967295, %s2548_s20   ;;  %p86_p0 = scmp.ne.s32.totalorder %s2540_s18, %s2536_s17  ;;  %s2548_s20 = sphi %s2637_s20, %s3063_s20   ;;  %s2544_s19 = sphi %s2635_s19, %s3062_s19   ;;  %s2540_s18 = sphi %s2633_s18, %s3061_s18   ;;  %s2536_s17 = sphi %s2631_s17, %s3060_s17  }
   0xb   : > { %p3032_p1 = scmp.eq.s32.totalorder %s2650_s21, 0  ;;  %p2042_p2 = scmp.ge.s32.totalorder %s2548_s20, 1 }
   0xc   : > { %p326_p3 = scmp.lt.s32.totalorder %s2548_s20, 3  ;;  %s2550_s24 = smov [#allocation3]  }
   0xd   : > { %p2659_p5 = por %p3032_p1, %p86_p0  ;;  %s338_s25 = sshll.u32 %s2550_s24, 4  ;;  %s339_s25 = int_to_ptr.vmem [resolvable:$true] %s338_s25 }
   0xe   : > { %p2663_p6 = pnand %p2042_p2, %p326_p3  ;;  %s2551_s27 = smov [#allocation6]  }
   0xf   : > { %s3040_s22 = scalar_select %p2659_p5, 1, 0 }
  0x10   : > { %s3041_s23 = scalar_select %p2663_p6, 1, 0 }
  0x11   : > { %p2288_p7 = pneg %p2663_p6  ;;  %s351_s28 = sshll.u32 %s2551_s27, 4  ;;  %s352_s28 = int_to_ptr.vmem [resolvable:$true] %s351_s28 }
  0x12   : > { %s2409_s29 = scalar_lea.vmem %s339_s25, 256  ;;  %p2417_p13 = scmp.lt.s32.totalorder %s339_s25, %s339_s25 }
  0x13   : > { %p2671_p8 = pnand %p2288_p7, %p3032_p1  ;;  %p2410_p10 = scmp.ne.s32.totalorder %s339_s25, %s2409_s29 }
  0x14   : > { %p2418_p0 = scmp.lt.s32.totalorder %s2409_s29, %s2409_s29 }
  0x15   : > { %p2400_p9 = pneg %p2671_p8 }
  0x16   : > { %p2419_p2 = por %p2418_p0, %p2417_p13 }
  0x17   : > { %p2412_p11 = pnand %p2410_p10, %p2400_p9 }
  0x19   : > { %p2413_p12 = pneg %p2412_p11 }
  0x1b   : > { %p2420_p3 = pnand %p2419_p2, %p2413_p12 }
  0x1d   : > { %2423 = shalt.err (!%p2420_p3)
}
  0x1e   : > { %s2552_s30 = smov 128   ;;  %s2553_s12 = smov 8  }
  0x1f   : > { %s3043_s0 = sld [smem:[#allocation15_spill]]  ;;  %s2435_s15 = scalar_lea.vmem %s352_s28, 256 }
  0x20   : > { %p2436_p7 = scmp.ne.s32.totalorder %s352_s28, %s2435_s15  ;;  %p2443_p4 = scmp.lt.s32.totalorder %s352_s28, %s352_s28 }
  0x21   : > { %p2444_p1 = scmp.lt.s32.totalorder %s2435_s15, %s2435_s15 }
  0x22   : > { %p2438_p10 = pnand %p2436_p7, %p2400_p9 }
  0x23   : > { %p2445_p13 = por %p2444_p1, %p2443_p4 }
  0x24   : > { %p2439_p11 = pneg %p2438_p10 }
  0x25   : > { %2291 = dma.hbm_to_vmem [thread:$0]  (!%p2671_p8), %s3043_s0, 256, %s339_s25, [#allocation4], %s2552_s30, %s2552_s30, %s2553_s12  }
  0x26   : > { %p2446_p12 = pnand %p2445_p13, %p2439_p11 }
  0x28   : > { %2449 = shalt.err (!%p2446_p12)
}
  0x29   : > { %s3044_s1 = sld [smem:[#allocation16_spill]]  ;;  %s2694_s24 = sadd.s32 1, %s2548_s20  }
  0x2a   : > { %s73_s25 = sadd.s32 1, %s2544_s19  ;;  %s70_s26 = ssub.s32 %s2548_s20, %s2694_s24 }
  0x2b   : > { %p80_p1 = scmp.ne.s32.totalorder %s2544_s19, %s2540_s18  ;;  %p71_p4 = scmp.eq.s32.totalorder %s70_s26, 0 }
  0x2c   : > { %p81_p9 = scmp.eq.s32.totalorder %s2548_s20, 0  ;;  %p2301_p0 = scmp.lt.s32.totalorder %s2548_s20, 2 }
  0x2d   : > { %s365_s27 = sand.u32 1, %s2548_s20   ;;  %s367_s13 = sand.u32 1, %s2544_s19  }
  0x2e   : > { %s2705_s29 = scalar_select %p71_p4, %s2544_s19, %s73_s25  }
  0x2f   : > { %2294 = dma.hbm_to_vmem [thread:$0]  (!%p2671_p8), %s3044_s1, 256, %s352_s28, [#allocation7], %s2552_s30, %s2552_s30, %s2553_s12  }
  0x30   : > { %3045 = sst [smem:[#allocation14_spill]] %s2705_s29  ;;  %p82_p2 = por %p81_p9, %p80_p1 }
  0x31   : > { %s2047_s14 = sshll.u32 %s2548_s20, 6  ;;  %s2046_s15 = sshll.u32 %s367_s13, 2 }
  0x32   : > { %s3046_s2 = sld [smem:[#allocation17_spill]]  ;;  %p2714_p8 = pnand %p2301_p0, %p82_p2 }
  0x33   : > { %s369_s12 = scalar_lea.vmem [#allocation8], %s2046_s15  ;;  %s366_s26 = scalar_lea.sflag [#allocation4], %s365_s27 }
  0x34   : > { %s376_s25 = sshll.u32 %s369_s12, 4  ;;  %p2452_p7 = pneg %p2714_p8  ;;  %s377_s25 = int_to_ptr.vmem [resolvable:$true] %s376_s25 }
  0x38   : > { %s2712_s28 = scalar_lea.hbm %s3046_s2, %s2047_s14  ;;  %s2455_s14 = scalar_lea.hbm %s3046_s2, 128 }
  0x39   : > { %s2450_s0 = scalar_lea.hbm %s2712_s28, 64  ;;  %p2456_p13 = scmp.lt.s32.totalorder %s2712_s28, %s3046_s2 }
  0x3a   : > { %p2451_p3 = scmp.ne.s32.totalorder %s2712_s28, %s2450_s0  ;;  %p2457_p12 = scmp.lt.s32.totalorder %s2455_s14, %s2450_s0 }
  0x3c   : > { %p2453_p10 = pnand %p2452_p7, %p2451_p3  ;;  %p2458_p1 = por %p2457_p12, %p2456_p13 }
  0x3e   : > { %p2454_p11 = pneg %p2453_p10 }
  0x40   : > { %p2459_p4 = pnand %p2458_p1, %p2454_p11 }
  0x42   : > { %2462 = shalt.err (!%p2459_p4)
}
  0x43   : > { %s2463_s15 = scalar_lea.vmem %s377_s25, 64  ;;  %s2554_s27 = smov [#allocation8]  }
  0x44   : > { %p2464_p9 = scmp.ne.s32.totalorder %s377_s25, %s2463_s15  ;;  %s2468_s12 = sshll.u32 %s2554_s27, 4  ;;  %s2469_s12 = int_to_ptr.vmem [resolvable:$false] %s2468_s12 }
  0x45   : > { %s2470_s1 = scalar_lea.vmem %s2469_s12, 128  ;;  %p2471_p3 = scmp.lt.s32.totalorder %s377_s25, %s2469_s12 }
  0x46   : > { %p2466_p0 = pnand %p2464_p9, %p2452_p7  ;;  %p2472_p10 = scmp.lt.s32.totalorder %s2470_s1, %s2463_s15 }
  0x48   : > { %p2467_p2 = pneg %p2466_p0  ;;  %p2473_p5 = por %p2472_p10, %p2471_p3 }
  0x4a   : > { %p2474_p6 = pnand %p2473_p5, %p2467_p2 }
  0x4c   : > { %2477 = shalt.err (!%p2474_p6)
}
  0x4d   : > { %2298 = dma.hbm_to_vmem [thread:$0]  (!%p2714_p8), %s2712_s28, 64, %s377_s25, %s366_s26  }
  0x4e   : > { %p3048_p11 = scmp.ne.s32.totalorder %s3041_s23, 0 }
  0x4f   : > { %p3049_p13 = scmp.eq.s32.totalorder (!%p3048_p11), %s2650_s21, 0 }
  0x50   : > { %441 = sbr.rel (%p3048_p11) target bundleno = 3554 (0xde2), region = 64 }
  0x55   : > { %2519 = dma.done.wait (%p3049_p13), [#allocation4], 256   ;;  %p3050_p7 = pmov %p3049_p13 }
  0x57   : > { %2521 = vsyncadd (%p3050_p7), [#allocation4], 4294967040  ;;  %p3051_p12 = pmov %p3050_p7 }
  0x58   : > { %p3052_p1 = pmov %p3050_p7 }
  0x59   : > { %2523 = dma.done.wait (%p3051_p12), [#allocation7], 256  }
  0x5a   : > { %2525 = vsyncadd (%p3052_p1), [#allocation7], 4294967040  ;;  %s451_s0 = sand.u32 1, %s2650_s21   ;;  %s453_s1 = sand.u32 1, %s2540_s18  }
  0x5b   : > { %s2744_s28 = sshll.u32 %s453_s1, 2  ;;  %s452_s23 = scalar_lea.sflag [#allocation4], %s451_s0 }
  0x5c   : > { %p3053_p5 = scmp.ne.s32.totalorder %s3040_s22, 0 }
  0x5e   : > { %2527 = dma.done.wait (%p3053_p5), %s452_s23, 64  }
  0x5f   : > { %2529 = vsyncadd (%p3053_p5), %s452_s23, 4294967232  ;;  %p521_p6 = scmp.lt.s32.totalorder %s2650_s21, 1  ;;  %s3054_s3 = sld [smem:[#allocation18_spill]] }
  0x60   : > { %s3055_s5 = sld [smem:[#allocation19_spill]]  ;;  %p3056_p8 = scmp.ne.s32.totalorder %s2650_s21, 0 }
  0x61   : > { %s2753_s25 = scalar_select %p521_p6, %s2650_s21, 1 }
  0x63   : > { %s2102_s26 = sshll.u32 %s2753_s25, 5  ;;  %s536_s23 = scalar_lea.vmem %s3026_s6, %s2753_s25 }
  0x64   : > { %s2777_s29 = scalar_lea.vmem %s3027_s7, %s2102_s26  ;;  %s544_s16 = scalar_lea.vmem %s3028_s8, %s2753_s25 }
  0x65   : > { %s2763_s22 = scalar_lea.vmem %s3054_s3, %s2102_s26  ;;  %s2105_s17 = sshll.u32 %s2753_s25, 6 }
  0x66   : > { %s2768_s12 = scalar_lea.vmem %s3055_s5, %s2102_s26  ;;  %s2787_s15 = scalar_lea.vmem %s3029_s9, %s2105_s17 }
  0x67   : > { %s552_s0 = scalar_lea.vmem %s3030_s10, %s2753_s25  ;;  %556 = sbr.rel (%p3056_p8) target bundleno = 110 (0x6e), region = 80 }
  0x6c   : > { %v557_v0 = vld [vmem:[#allocation3] sm:$0xff]  ;;  %vm559_vm0 = vcmask 261120   ;;  %v558_v1 = vld [vmem:[#allocation3 + $0x8] sm:$0xff] }
  0x6d   : > { %560 = vst.msk [vmem:[#allocation2] sm:$0xff] %vm559_vm0, %v557_v0  ;;  %561 = vst.msk [vmem:[#allocation2 + $0x8] sm:$0xff] %vm559_vm0, %v558_v1 }
  0x6e PF: > { %vm567_vm1 = vcmask 261120   ;;  %v610_v16 = vld [vmem:[%s2763_s22 + $0x18] sm:$0xff]  ;;  %v609_v17 = vld [vmem:[%s2763_s22 + $0x10] sm:$0xff]  ;;  %v608_v18 = vld [vmem:[%s2763_s22 + $0x8] sm:$0xff]  ;;  %v595_v25 = vlaneseq  ;;  %s3057_s2 = scalar_lea.vmem [#allocation8], %s2744_s28  ;;  %s3058_s28 = scalar_lea.vmem %s3024_s4, %s2753_s25  ;;  %vm705_vm2 = vcmask 64512  }
  0x6f   : > { %2166 = vmatprep.subr.mxu1 %v610_v16  ;;  %v607_v19 = vld [vmem:[%s2763_s22] sm:$0xff]  ;;  %v2816_v29 = vld [vmem:[%s3057_s2] sm:$0xf]  ;;  %s2555_s30 = smov 96   ;;  %s2556_s26 = smov 120   ;;  %v2852_v53 = vld [vmem:[#allocation6 + $0x8] sm:$0xff] }
  0x70   : > { %2167 = vmatpush3.msra.mxu1 %v610_v16  ;;  %v2811_v27 = vshrl.u32 %v595_v25, 7  ;;  %v2061_v41 = vld [vmem:[%s3058_s28] ss:$0 sm:$0xff]  ;;  %s2557_s14 = smov 88   ;;  %vm793_vm3 = vcmask 130048   ;;  %s2558_s22 = smov 64  }
  0x71   : > { %2168 = vmatprep.subr.mxu1 %v609_v17  ;;  %v2854_v56 = vld [vmem:[#allocation6] sm:$0xff]  ;;  %s2559_s1 = smov 56   ;;  %s2560_s20 = smov 80   ;;  %vm1543_vm4 = vcmask 195584   ;;  %vm1787_vm5 = vcmask 523264  }
  0x72   : > { %2169 = vmatpush3.msra.mxu1 %v609_v17  ;;  %v597_v28 = vsub.s32 0, %v2811_v27  ;;  %v603_v30 = vsub.s32 1, %v2811_v27  ;;  %s2561_s13 = smov 112   ;;  %s2562_s17 = smov 48  }
  0x73   : > { %2170 = vmatprep.subr.mxu1 %v608_v18  ;;  %s2563_s27 = smov 72   ;;  %s2564_s2 = smov 104  }
  0x74   : > { %v2795_v2 = vld [vmem:[#allocation2] sm:$0xff]  ;;  %v2797_v3 = vld [vmem:[#allocation2 + $0x8] sm:$0xff]  ;;  %2171 = vmatpush3.msra.mxu1 %v608_v18  ;;  %v598_v31 = vrot.slane %v2816_v29, %v597_v28  ;;  %v604_v34 = vrot.slane %v2816_v29, %v603_v30  ;;  %s2565_s3 = smov 40   ;;  %s2566_s5 = smov 8  }
  0x75   : > { %v568_v4 = vsel %vm567_vm1, %v2795_v2, 0.0  ;;  %v571_v5 = vsel %vm567_vm1, %v2797_v3, 0.0  ;;  %2172 = vmatprep.subr.mxu1 %v607_v19  ;;  %s2567_s28 = smov 16   ;;  %p2097_p4 = scmp.ne.s32.totalorder %s2650_s21, 1 }
  0x76   : > { %569 = vadd.xlane.f32.xlu0 %v568_v4  ;;  %2173 = vmatpush3.msra.mxu1 %v607_v19 }
  0x7a   : > { %572 = vadd.xlane.f32.xlu0 %v571_v5 }
  0xff   : > { %v570_v6 = vpop.xlane.xlu0 %569 }
 0x100   : > { %v575_v7 = vmul.f32 0.03125, %v570_v6 }
 0x102   : > { %v577_v8 = vsub.f32 %v2795_v2, %v575_v7 }
 0x103   : > { %v573_v9 = vpop.xlane.xlu0 %572 }
 0x104   : > { %v576_v10 = vmul.f32 0.03125, %v573_v9  ;;  %v579_v11 = vmul.f32 %v577_v8, %v577_v8 }
 0x106   : > { %v578_v12 = vsub.f32 %v2797_v3, %v576_v10  ;;  %v581_v13 = vsel %vm567_vm1, %v579_v11, 0.0 }
 0x107   : > { %582 = vadd.xlane.f32.xlu1 %v581_v13 }
 0x108   : > { %v580_v14 = vmul.f32 %v578_v12, %v578_v12 }
 0x10a   : > { %v584_v15 = vsel %vm567_vm1, %v580_v14, 0.0 }
 0x10b   : > { %585 = vadd.xlane.f32.xlu1 %v584_v15 }
 0x190   : > { %v583_v20 = vpop.xlane.xlu1 %582 }
 0x191   : > { %v587_v21 = vmul.f32 0.03125, %v583_v20 }
 0x193   : > { %v589_v22 = vadd.f32 1e-05, %v587_v21 }
 0x194   : > { %v586_v23 = vpop.xlane.xlu1 %585 }
 0x195   : > { %2358 = vrsqrt.f32 %v589_v22  ;;  %v588_v24 = vmul.f32 0.03125, %v586_v23 }
 0x197   : > { %v590_v26 = vadd.f32 1e-05, %v588_v24 }
 0x199   : > { %2360 = vrsqrt.f32 %v590_v26 }
 0x1a2   : > { %v2359_v32 = vpop.eup %2358 }
 0x1a3   : > { %v593_v33 = vmul.f32 %v2359_v32, %v577_v8 }
 0x1a5   : > { %v599_v35 = vmul.f32 %v598_v31, %v593_v33 }
 0x1a6   : > { %v2361_v36 = vpop.eup %2360 }
 0x1a7   : > { %v594_v37 = vmul.f32 %v2361_v36, %v578_v12  ;;  %v605_v38 = vadd.f32 %v604_v34, %v599_v35 }
 0x1a9   : > { %v600_v39 = vmul.f32 %v598_v31, %v594_v37  ;;  %2174 = vmatprep.mubr.msk.f32.mxu1 %vm567_vm1, %v605_v38 }
 0x1ab   : > { %v606_v40 = vadd.f32 %v604_v34, %v600_v39 }
 0x1ad   : > { %2175 = vmatmul.mubr.msk.f32.vlgmr.msra.gmra.mxu1 %vm567_vm1, %v606_v40 }
 0x26d   : > { %v2176_v42 = vpop.f32.mrf.mxu1 }
 0x26e   : > { %v2828_v43 = vadd.f32 %v2176_v42, %v2061_v41 }
 0x26f   : > { %v690_v44 = vpop.f32.mrf.mxu1 }
 0x270   : > { %v2830_v45 = vadd.f32 %v2061_v41, %v690_v44  ;;  %703 = vrot.lane.b32.xlu0 %v2828_v43, %s2555_s30 }
 0x272   : > { %701 = vrot.lane.b32.xlu1 %v2830_v45, %s2555_s30  ;;  %2181 = vmatprep.mubr.msk.f32.mxu1 %vm705_vm2, %v2830_v45  ;;  %s2568_s30 = smov 24  }
 0x274   : > { %903 = vrot.lane.b32.xlu0 %v2830_v45, %s2556_s26 }
 0x276   : > { %909 = vrot.lane.b32.xlu1 %v2828_v43, %s2557_s14 }
 0x27a   : > { %907 = vrot.lane.b32.xlu1 %v2830_v45, %s2557_s14 }
 0x27e   : > { %905 = vrot.lane.b32.xlu1 %v2828_v43, %s2556_s26 }
 0x2e2   : > { %v704_v46 = vpop.permute.xlu0 %703 }
 0x2e3   : > { %2177 = vmatprep.subr.msk.mxu1 %vm705_vm2, %v704_v46 }
 0x2e4   : > { %2178 = vmatpush3.xpose.msk.msra.mxu1 %vm705_vm2, %v704_v46  ;;  %v702_v47 = vpop.permute.xlu1 %701 }
 0x2e5   : > { %2179 = vmatprep.subr.msk.mxu1 %vm705_vm2, %v702_v47 }
 0x2e6   : > { %v904_v49 = vpop.permute.xlu0 %903 }
 0x2e8   : > { %2180 = vmatpush3.xpose.msk.msra.mxu1 %vm705_vm2, %v702_v47  ;;  %v910_v48 = vpop.permute.xlu1 %909 }
 0x2e9   : > { %2191 = vmatprep.subr.msk.mxu1 %vm705_vm2, %v910_v48 }
 0x2eb   : > { %2182 = vmatmul.mubr.msk.f32.vlgmr.msra.gmra.mxu1 %vm705_vm2, %v2828_v43 }
 0x2ec   : > { %v908_v50 = vpop.permute.xlu1 %907  ;;  %2192 = vmatpush3.xpose.msk.msra.mxu1 %vm705_vm2, %v910_v48  ;;  %2195 = vmatprep.mubr.msk.f32.mxu1 %vm705_vm2, %v904_v49 }
 0x2ed   : > { %2193 = vmatprep.subr.msk.mxu1 %vm705_vm2, %v908_v50 }
 0x2f0   : > { %2194 = vmatpush3.xpose.msk.msra.mxu1 %vm705_vm2, %v908_v50  ;;  %v906_v51 = vpop.permute.xlu1 %905 }
 0x2f3   : > { %2196 = vmatmul.mubr.msk.f32.vlgmr.msra.gmra.mxu1 %vm705_vm2, %v906_v51 }
 0x3ab   : > { %v2183_v52 = vpop.f32.mrf.mxu1 }
 0x3ac   : > { %v790_v54 = vmul.f32 0.35355338, %v2183_v52 }
 0x3ad   : > { %v780_v55 = vpop.f32.mrf.mxu1 }
 0x3ae   : > { %v789_v57 = vmul.f32 0.35355338, %v780_v55  ;;  %v792_v58 = vadd.f32 %v790_v54, %v2852_v53 }
 0x3b0   : > { %v797_v59 = vsel %vm793_vm3, %v792_v58, -inf  ;;  %v791_v60 = vadd.f32 %v789_v57, %v2854_v56 }
 0x3b1   : > { %798 = vmax.xlane.f32.xlu1 %v797_v59 }
 0x3b2   : > { %v794_v61 = vsel %vm793_vm3, %v791_v60, -inf }
 0x3b3   : > { %v2197_v62 = vpop.f32.mrf.mxu1  ;;  %795 = vmax.xlane.f32.xlu0 %v794_v61 }
 0x3b4   : > { %v995_v0 = vmul.f32 0.35355338, %v2197_v62 }
 0x3b5   : > { %v985_v63 = vpop.f32.mrf.mxu1 }
 0x3b6   : > { %v994_v1 = vmul.f32 0.35355338, %v985_v63  ;;  %v997_v6 = vadd.f32 %v995_v0, %v2852_v53 }
 0x3b8   : > { %v996_v4 = vadd.f32 %v994_v1, %v2854_v56  ;;  %v1001_v7 = vsel %vm793_vm3, %v997_v6, -inf }
 0x3ba   : > { %v998_v5 = vsel %vm793_vm3, %v996_v4, -inf }
 0x3bb   : > { %999 = vmax.xlane.f32.xlu0 %v998_v5 }
 0x3bf   : > { %1002 = vmax.xlane.f32.xlu0 %v1001_v7 }
 0x3c2   : > { %816 = vrot.lane.b32.xlu1 %v2830_v45, %s2558_s22 }
 0x3c6   : > { %1022 = vrot.lane.b32.xlu1 %v2828_v43, %s2559_s1 }
 0x3ca   : > { %1020 = vrot.lane.b32.xlu1 %v2830_v45, %s2559_s1 }
 0x3d5   : > { %818 = vrot.lane.b32.xlu0 %v2828_v43, %s2558_s22 }
 0x43a   : > { %v799_v8 = vpop.xlane.xlu1 %798 }
 0x43b   : > { %v801_v9 = vsub.f32 %v792_v58, %v799_v8 }
 0x43c   : > { %v796_v10 = vpop.xlane.xlu0 %795 }
 0x43d   : > { %v804_v11 = vmul.f32 1.442695, %v801_v9  ;;  %v800_v12 = vsub.f32 %v791_v60, %v796_v10 }
 0x43e   : > { %v817_v19 = vpop.permute.xlu1 %816 }
 0x43f   : > { %2362 = vpow2.f32 %v804_v11  ;;  %v802_v13 = vmul.f32 1.442695, %v800_v12 }
 0x441   : > { %2364 = vpow2.f32 %v802_v13 }
 0x442   : > { %v1023_v26 = vpop.permute.xlu1 %1022 }
 0x444   : > { %v1000_v14 = vpop.xlane.xlu0 %999 }
 0x445   : > { %v1004_v15 = vsub.f32 %v996_v4, %v1000_v14 }
 0x446   : > { %v1021_v33 = vpop.permute.xlu1 %1020 }
 0x447   : > { %v1006_v16 = vmul.f32 1.442695, %v1004_v15 }
 0x448   : > { %v1003_v17 = vpop.xlane.xlu0 %1002 }
 0x449   : > { %2366 = vpow2.f32 %v1006_v16  ;;  %v1005_v18 = vsub.f32 %v997_v6, %v1003_v17 }
 0x44b   : > { %v1008_v20 = vmul.f32 1.442695, %v1005_v18 }
 0x44c   : > { %v2363_v21 = vpop.eup %2362  ;;  %v819_v22 = vpop.permute.xlu0 %818 }
 0x44d   : > { %2368 = vpow2.f32 %v1008_v20  ;;  %2184 = vmatprep.subr.mxu0 %v819_v22  ;;  %v809_v23 = vsel %vm793_vm3, %v2363_v21, 0.0 }
 0x44e   : > { %v2365_v24 = vpop.eup %2364  ;;  %810 = vadd.xlane.f32.xlu1 %v809_v23  ;;  %2185 = vmatpush3.msra.mxu0 %v819_v22 }
 0x44f   : > { %2186 = vmatprep.subr.mxu0 %v817_v19  ;;  %v806_v25 = vsel %vm793_vm3, %v2365_v24, 0.0 }
 0x450   : > { %807 = vadd.xlane.f32.xlu0 %v806_v25  ;;  %2187 = vmatpush3.msra.mxu0 %v817_v19 }
 0x451   : > { %2198 = vmatprep.subr.mxu0 %v1023_v26 }
 0x456   : > { %v2367_v28 = vpop.eup %2366 }
 0x457   : > { %v1010_v30 = vsel %vm793_vm3, %v2367_v28, 0.0 }
 0x458   : > { %1011 = vadd.xlane.f32.xlu0 %v1010_v30 }
 0x45a   : > { %v2369_v31 = vpop.eup %2368 }
 0x45b   : > { %v1013_v32 = vsel %vm793_vm3, %v2369_v31, 0.0 }
 0x45c   : > { %1014 = vadd.xlane.f32.xlu1 %v1013_v32 }
 0x46d   : > { %1111 = vrot.lane.b32.xlu1 %v2830_v45, %s2560_s20 }
 0x46e   : > { %1113 = vrot.lane.b32.xlu0 %v2828_v43, %s2560_s20 }
 0x471   : > { %1109 = vrot.lane.b32.xlu1 %v2828_v43, %s2561_s13 }
 0x472   : > { %1107 = vrot.lane.b32.xlu0 %v2830_v45, %s2561_s13 }
 0x4d7   : > { %v811_v34 = vpop.xlane.xlu1 %810 }
 0x4d8   : > { %2370 = vrcp.f32 %v811_v34 }
 0x4d9   : > { %v808_v35 = vpop.xlane.xlu0 %807 }
 0x4da   : > { %2372 = vrcp.f32 %v808_v35 }
 0x4e1   : > { %v1012_v36 = vpop.xlane.xlu0 %1011 }
 0x4e2   : > { %2374 = vrcp.f32 %v1012_v36 }
 0x4e5   : > { %v1015_v37 = vpop.xlane.xlu1 %1014  ;;  %v2371_v38 = vpop.eup %2370 }
 0x4e6   : > { %2376 = vrcp.f32 %v1015_v37  ;;  %v815_v41 = vmul.f32 %v2371_v38, %v2363_v21  ;;  %v1114_v42 = vpop.permute.xlu0 %1113 }
 0x4e7   : > { %v2373_v39 = vpop.eup %2372 }
 0x4e8   : > { %v814_v40 = vmul.f32 %v2373_v39, %v2365_v24 }
 0x4e9   : > { %v1112_v50 = vpop.permute.xlu1 %1111 }
 0x4ea   : > { %2188 = vmatprep.mubr.msk.f32.mxu0 %vm793_vm3, %v814_v40  ;;  %v1108_v49 = vpop.permute.xlu0 %1107 }
 0x4eb   : > { %2189 = vmatmul.mubr.msk.f32.vlgmr.msra.gmra.mxu0 %vm793_vm3, %v815_v41 }
 0x4ec   : > { %2199 = vmatpush3.msra.mxu0 %v1023_v26 }
 0x4ed   : > { %2200 = vmatprep.subr.mxu0 %v1021_v33  ;;  %v1110_v51 = vpop.permute.xlu1 %1109 }
 0x4ee   : > { %2201 = vmatpush3.msra.mxu0 %v1021_v33 }
 0x4ef   : > { %v2375_v44 = vpop.eup %2374  ;;  %2205 = vmatprep.subr.msk.mxu0 %vm705_vm2, %v1114_v42 }
 0x4f0   : > { %v1018_v46 = vmul.f32 %v2375_v44, %v2367_v28 }
 0x4f2   : > { %2202 = vmatprep.mubr.msk.f32.mxu0 %vm793_vm3, %v1018_v46 }
 0x4f3   : > { %v2377_v47 = vpop.eup %2376 }
 0x4f4   : > { %v1019_v48 = vmul.f32 %v2377_v47, %v2369_v31 }
 0x4f6   : > { %2203 = vmatmul.mubr.msk.f32.vlgmr.msra.gmra.mxu0 %vm793_vm3, %v1019_v48 }
 0x4f7   : > { %2206 = vmatpush3.xpose.msk.msra.mxu0 %vm705_vm2, %v1114_v42  ;;  %2209 = vmatprep.mubr.msk.f32.mxu0 %vm705_vm2, %v1108_v49 }
 0x4f8   : > { %2207 = vmatprep.subr.msk.mxu0 %vm705_vm2, %v1112_v50 }
 0x4fb   : > { %2208 = vmatpush3.xpose.msk.msra.mxu0 %vm705_vm2, %v1112_v50 }
 0x4fe   : > { %2210 = vmatmul.mubr.msk.f32.vlgmr.msra.gmra.mxu0 %vm705_vm2, %v1110_v51 }
 0x5ab   : > { %v2886_v52 = vpop.f32.mrf.mxu0 }
 0x5ad   : > { %v2888_v54 = vpop.f32.mrf.mxu0 }
 0x5b6   : > { %v2890_v55 = vpop.f32.mrf.mxu0 }
 0x5b8   : > { %v2892_v57 = vpop.f32.mrf.mxu0 }
 0x5be   : > { %v2211_v58 = vpop.f32.mrf.mxu0 }
 0x5bf   : > { %v1199_v59 = vmul.f32 0.35355338, %v2211_v58 }
 0x5c0   : > { %v1189_v60 = vpop.f32.mrf.mxu0 }
 0x5c1   : > { %v1198_v61 = vmul.f32 0.35355338, %v1189_v60  ;;  %v1201_v62 = vadd.f32 %v1199_v59, %v2852_v53  ;;  %v1548_v59 = vld [vmem:[%s2768_s12 + $0x10] sm:$0xff]  ;;  %v1547_v60 = vld [vmem:[%s2768_s12 + $0x8] sm:$0xff] }
 0x5c3   : > { %v1205_v63 = vsel %vm793_vm3, %v1201_v62, -inf  ;;  %v1200_v0 = vadd.f32 %v1198_v61, %v2854_v56  ;;  %v1546_v61 = vld [vmem:[%s2768_s12] sm:$0xff] }
 0x5c4   : > { %1206 = vmax.xlane.f32.xlu1 %v1205_v63 }
 0x5c5   : > { %v1202_v1 = vsel %vm793_vm3, %v1200_v0, -inf }
 0x5c6   : > { %1203 = vmax.xlane.f32.xlu0 %v1202_v1 }
 0x5d5   : > { %1224 = vrot.lane.b32.xlu1 %v2830_v45, %s2562_s17 }
 0x5d9   : > { %1317 = vrot.lane.b32.xlu1 %v2828_v43, %s2563_s27 }
 0x5dd   : > { %1315 = vrot.lane.b32.xlu1 %v2830_v45, %s2563_s27 }
 0x5e1   : > { %1313 = vrot.lane.b32.xlu1 %v2828_v43, %s2564_s2 }
 0x64d   : > { %v1207_v4 = vpop.xlane.xlu1 %1206 }
 0x64e   : > { %v1209_v5 = vsub.f32 %v1201_v62, %v1207_v4 }
 0x64f   : > { %v1204_v6 = vpop.xlane.xlu0 %1203 }
 0x650   : > { %v1212_v7 = vmul.f32 1.442695, %v1209_v5  ;;  %v1208_v8 = vsub.f32 %v1200_v0, %v1204_v6 }
 0x651   : > { %v1225_v16 = vpop.permute.xlu1 %1224 }
 0x652   : > { %2378 = vpow2.f32 %v1212_v7  ;;  %v1210_v9 = vmul.f32 1.442695, %v1208_v8 }
 0x654   : > { %2380 = vpow2.f32 %v1210_v9 }
 0x655   : > { %v1318_v18 = vpop.permute.xlu1 %1317 }
 0x659   : > { %v1316_v24 = vpop.permute.xlu1 %1315 }
 0x65d   : > { %v1314_v25 = vpop.permute.xlu1 %1313 }
 0x65f   : > { %v2379_v10 = vpop.eup %2378 }
 0x660   : > { %v1217_v11 = vsel %vm793_vm3, %v2379_v10, 0.0 }
 0x661   : > { %v2381_v12 = vpop.eup %2380  ;;  %1218 = vadd.xlane.f32.xlu0 %v1217_v11 }
 0x662   : > { %v1214_v13 = vsel %vm793_vm3, %v2381_v12, 0.0 }
 0x665   : > { %1215 = vadd.xlane.f32.xlu0 %v1214_v13 }
 0x67b   : > { %1226 = vrot.lane.b32.xlu0 %v2828_v43, %s2562_s17 }
 0x67f   : > { %1311 = vrot.lane.b32.xlu0 %v2830_v45, %s2564_s2 }
 0x6ea   : > { %v1219_v14 = vpop.xlane.xlu0 %1218 }
 0x6eb   : > { %2382 = vrcp.f32 %v1219_v14 }
 0x6ee   : > { %v1216_v15 = vpop.xlane.xlu0 %1215 }
 0x6ef   : > { %2384 = vrcp.f32 %v1216_v15 }
 0x6f2   : > { %v1227_v17 = vpop.permute.xlu0 %1226 }
 0x6f3   : > { %2212 = vmatprep.subr.mxu1 %v1227_v17 }
 0x6f4   : > { %2213 = vmatpush3.msra.mxu1 %v1227_v17 }
 0x6f5   : > { %2214 = vmatprep.subr.mxu1 %v1225_v16 }
 0x6f6   : > { %2215 = vmatpush3.msra.mxu1 %v1225_v16  ;;  %v1312_v23 = vpop.permute.xlu0 %1311 }
 0x6f7   : > { %2219 = vmatprep.subr.msk.mxu1 %vm705_vm2, %v1318_v18 }
 0x6f8   : > { %v2383_v19 = vpop.eup %2382 }
 0x6f9   : > { %v1223_v22 = vmul.f32 %v2383_v19, %v2379_v10 }
 0x6fc   : > { %v2385_v20 = vpop.eup %2384 }
 0x6fd   : > { %v1222_v21 = vmul.f32 %v2385_v20, %v2381_v12 }
 0x6ff   : > { %2216 = vmatprep.mubr.msk.f32.mxu1 %vm793_vm3, %v1222_v21 }
 0x700   : > { %2217 = vmatmul.mubr.msk.f32.vlgmr.msra.gmra.mxu1 %vm793_vm3, %v1223_v22 }
 0x701   : > { %2220 = vmatpush3.xpose.msk.msra.mxu1 %vm705_vm2, %v1318_v18  ;;  %2223 = vmatprep.mubr.msk.f32.mxu1 %vm705_vm2, %v1312_v23 }
 0x702   : > { %2221 = vmatprep.subr.msk.mxu1 %vm705_vm2, %v1316_v24 }
 0x705   : > { %2222 = vmatpush3.xpose.msk.msra.mxu1 %vm705_vm2, %v1316_v24 }
 0x708   : > { %2224 = vmatmul.mubr.msk.f32.vlgmr.msra.gmra.mxu1 %vm705_vm2, %v1314_v25 }
 0x7c0   : > { %v2218_v26 = vpop.f32.mrf.mxu1 }
 0x7c2   : > { %v1302_v28 = vpop.f32.mrf.mxu1 }
 0x7c8   : > { %v2225_v30 = vpop.f32.mrf.mxu1 }
 0x7c9   : > { %v1403_v31 = vmul.f32 0.35355338, %v2225_v30 }
 0x7ca   : > { %v1393_v32 = vpop.f32.mrf.mxu1 }
 0x7cb   : > { %v1402_v33 = vmul.f32 0.35355338, %v1393_v32  ;;  %v1405_v34 = vadd.f32 %v1403_v31, %v2852_v53  ;;  %v1681_v31 = vld [vmem:[%s2777_s29 + $0x18] sm:$0xff]  ;;  %v1680_v32 = vld [vmem:[%s2777_s29 + $0x10] sm:$0xff] }
 0x7cc   : > { %2244 = vmatprep.subr.mxu1 %v1681_v31 }
 0x7cd   : > { %v1409_v35 = vsel %vm793_vm3, %v1405_v34, -inf  ;;  %v1404_v36 = vadd.f32 %v1402_v33, %v2854_v56  ;;  %2245 = vmatpush3.msra.mxu1 %v1681_v31  ;;  %v1679_v33 = vld [vmem:[%s2777_s29 + $0x8] sm:$0xff] }
 0x7ce   : > { %1410 = vmax.xlane.f32.xlu1 %v1409_v35  ;;  %2246 = vmatprep.subr.mxu1 %v1680_v32  ;;  %v1779_v35 = vld [vmem:[%s2787_s15 + $0x38] sm:$0xff] }
 0x7cf   : > { %v1406_v37 = vsel %vm793_vm3, %v1404_v36, -inf  ;;  %2247 = vmatpush3.msra.mxu1 %v1680_v32 }
 0x7d0   : > { %1407 = vmax.xlane.f32.xlu0 %v1406_v37  ;;  %2248 = vmatprep.subr.mxu1 %v1679_v33  ;;  %v1777_v37 = vld [vmem:[%s2787_s15 + $0x28] sm:$0xff] }
 0x7d1   : > { %2249 = vmatpush3.msra.mxu1 %v1679_v33 }
 0x7df   : > { %1428 = vrot.lane.b32.xlu1 %v2830_v45, %s2565_s3 }
 0x7e3   : > { %1517 = vrot.lane.b32.xlu1 %v2892_v57, %s2566_s5 }
 0x7e7   : > { %1519 = vrot.lane.b32.xlu1 %v2890_v55, %s2566_s5 }
 0x7eb   : > { %1527 = vrot.lane.b32.xlu1 %v2218_v26, %s2567_s28 }
 0x857   : > { %v1411_v53 = vpop.xlane.xlu1 %1410 }
 0x858   : > { %v1413_v38 = vsub.f32 %v1405_v34, %v1411_v53  ;;  %v1678_v34 = vld [vmem:[%s2777_s29] sm:$0xff] }
 0x859   : > { %v1408_v39 = vpop.xlane.xlu0 %1407  ;;  %2250 = vmatprep.subr.mxu1 %v1678_v34  ;;  %v1776_v53 = vld [vmem:[%s2787_s15 + $0x20] sm:$0xff] }
 0x85a   : > { %v1416_v56 = vmul.f32 1.442695, %v1413_v38  ;;  %v1412_v40 = vsub.f32 %v1404_v36, %v1408_v39  ;;  %2251 = vmatpush3.msra.mxu1 %v1678_v34  ;;  %v1778_v36 = vld [vmem:[%s2787_s15 + $0x30] sm:$0xff] }
 0x85b   : > { %v1429_v50 = vpop.permute.xlu1 %1428 }
 0x85c   : > { %2386 = vpow2.f32 %v1416_v56  ;;  %v1414_v41 = vmul.f32 1.442695, %v1412_v40 }
 0x85e   : > { %2388 = vpow2.f32 %v1414_v41 }
 0x85f   : > { %v1518_v0 = vpop.permute.xlu1 %1517 }
 0x860   : > { %v1539_v6 = vsel %vm705_vm2, %v2888_v54, %v1518_v0  ;;  %v2088_v54 = vld [vmem:[%s536_s23] ss:$0 sm:$0xff] }
 0x863   : > { %v1520_v1 = vpop.permute.xlu1 %1519 }
 0x864   : > { %v1540_v8 = vsel %vm705_vm2, %v2886_v52, %v1520_v1 }
 0x867   : > { %v1528_v4 = vpop.permute.xlu1 %1527 }
 0x868   : > { %v1542_v11 = vsel %vm793_vm3, %v1540_v8, %v1528_v4 }
 0x869   : > { %v2387_v42 = vpop.eup %2386 }
 0x86a   : > { %v1421_v45 = vsel %vm793_vm3, %v2387_v42, 0.0 }
 0x86b   : > { %v2389_v44 = vpop.eup %2388  ;;  %1422 = vadd.xlane.f32.xlu0 %v1421_v45  ;;  %v1668_v45 = vsub.s32 2, %v2811_v27 }
 0x86c   : > { %v1418_v46 = vsel %vm793_vm3, %v2389_v44, 0.0 }
 0x86f   : > { %1419 = vadd.xlane.f32.xlu0 %v1418_v46  ;;  %v1669_v46 = vrot.slane %v2816_v29, %v1668_v45 }
 0x885   : > { %1430 = vrot.lane.b32.xlu0 %v2828_v43, %s2565_s3  ;;  %v1549_v43 = vld [vmem:[%s2768_s12 + $0x18] sm:$0xff] }
 0x889   : > { %1525 = vrot.lane.b32.xlu0 %v1302_v28, %s2567_s28 }
 0x8f4   : > { %v1423_v47 = vpop.xlane.xlu0 %1422 }
 0x8f5   : > { %2390 = vrcp.f32 %v1423_v47 }
 0x8f8   : > { %v1420_v48 = vpop.xlane.xlu0 %1419 }
 0x8f9   : > { %2392 = vrcp.f32 %v1420_v48 }
 0x8fc   : > { %v1431_v49 = vpop.permute.xlu0 %1430 }
 0x8fd   : > { %2226 = vmatprep.subr.mxu0 %v1431_v49 }
 0x8fe   : > { %2227 = vmatpush3.msra.mxu0 %v1431_v49 }
 0x8ff   : > { %2228 = vmatprep.subr.mxu0 %v1429_v50 }
 0x900   : > { %2229 = vmatpush3.msra.mxu0 %v1429_v50  ;;  %v1526_v5 = vpop.permute.xlu0 %1525 }
 0x901   : > { %2233 = vmatprep.subr.mxu0 %v1549_v43  ;;  %v1541_v9 = vsel %vm793_vm3, %v1539_v6, %v1526_v5  ;;  %v2094_v6 = vld [vmem:[%s552_s0] ss:$0 sm:$0xff] }
 0x902   : > { %v2391_v51 = vpop.eup %2390 }
 0x903   : > { %v1427_v58 = vmul.f32 %v2391_v51, %v2387_v42 }
 0x906   : > { %v2393_v55 = vpop.eup %2392 }
 0x907   : > { %v1426_v57 = vmul.f32 %v2393_v55, %v2389_v44  ;;  %v1674_v44 = vsub.s32 3, %v2811_v27  ;;  %v1775_v27 = vld [vmem:[%s2787_s15 + $0x18] sm:$0xff] }
 0x909   : > { %2230 = vmatprep.mubr.msk.f32.mxu0 %vm793_vm3, %v1426_v57  ;;  %v1675_v49 = vrot.slane %v2816_v29, %v1674_v44  ;;  %v1772_v29 = vld [vmem:[%s2787_s15] sm:$0xff] }
 0x90a   : > { %2231 = vmatmul.mubr.msk.f32.vlgmr.msra.gmra.mxu0 %vm793_vm3, %v1427_v58 }
 0x90b   : > { %2234 = vmatpush3.msra.mxu0 %v1549_v43 }
 0x90c   : > { %2235 = vmatprep.subr.mxu0 %v1548_v59 }
 0x90d   : > { %2236 = vmatpush3.msra.mxu0 %v1548_v59  ;;  %v1774_v59 = vld [vmem:[%s2787_s15 + $0x10] sm:$0xff] }
 0x90e   : > { %2237 = vmatprep.subr.mxu0 %v1547_v60 }
 0x90f   : > { %2238 = vmatpush3.msra.mxu0 %v1547_v60  ;;  %v1773_v60 = vld [vmem:[%s2787_s15 + $0x8] sm:$0xff] }
 0x910   : > { %2239 = vmatprep.subr.mxu0 %v1546_v61 }
 0x911   : > { %2240 = vmatpush3.msra.mxu0 %v1546_v61  ;;  %v2091_v61 = vld [vmem:[%s544_s16] ss:$0 sm:$0xff] }
 0x912   : > { %2255 = vmatprep.subr.mxu0 %v1779_v35 }
 0x9ca   : > { %v2232_v62 = vpop.f32.mrf.mxu0 }
 0x9cb   : > { %1535 = vrot.lane.b32.xlu1 %v2232_v62, %s2568_s30 }
 0x9cc   : > { %v1506_v63 = vpop.f32.mrf.mxu0 }
 0x9cd   : > { %1533 = vrot.lane.b32.xlu0 %v1506_v63, %s2568_s30 }
 0xa3d   : > { %v1536_v7 = vpop.permute.xlu1 %1535 }
 0xa3e   : > { %v1545_v13 = vsel %vm1543_vm4, %v1542_v11, %v1536_v7 }
 0xa3f   : > { %v1534_v10 = vpop.permute.xlu0 %1533 }
 0xa40   : > { %v1544_v12 = vsel %vm1543_vm4, %v1541_v9, %v1534_v10 }
 0xa41   : > { %2241 = vmatprep.mubr.msk.f32.mxu0 %vm567_vm1, %v1544_v12 }
 0xa42   : > { %2242 = vmatmul.mubr.msk.f32.vlgmr.msra.gmra.mxu0 %vm567_vm1, %v1545_v13 }
 0xa43   : > { %2256 = vmatpush3.msra.mxu0 %v1779_v35 }
 0xa44   : > { %2257 = vmatprep.subr.mxu0 %v1778_v36 }
 0xa45   : > { %2258 = vmatpush3.msra.mxu0 %v1778_v36 }
 0xa46   : > { %2259 = vmatprep.subr.mxu0 %v1777_v37 }
 0xa47   : > { %2260 = vmatpush3.msra.mxu0 %v1777_v37 }
 0xa48   : > { %2261 = vmatprep.subr.mxu0 %v1776_v53 }
 0xa49   : > { %2262 = vmatpush3.msra.mxu0 %v1776_v53 }
 0xa4a   : > { %2263 = vmatprep.subr.mxu0 %v1775_v27 }
 0xa4b   : > { %2264 = vmatpush3.msra.mxu0 %v1775_v27 }
 0xa4c   : > { %2265 = vmatprep.subr.mxu0 %v1774_v59 }
 0xa4d   : > { %2266 = vmatpush3.msra.mxu0 %v1774_v59 }
 0xa4e   : > { %2267 = vmatprep.subr.mxu0 %v1773_v60 }
 0xa4f   : > { %2268 = vmatpush3.msra.mxu0 %v1773_v60 }
 0xa50   : > { %2269 = vmatprep.subr.mxu0 %v1772_v29 }
 0xa51   : > { %2270 = vmatpush3.msra.mxu0 %v1772_v29 }
 0xb02   : > { %v2243_v14 = vpop.f32.mrf.mxu0 }
 0xb03   : > { %v1635_v15 = vadd.f32 %v2243_v14, %v2088_v54 }
 0xb04   : > { %v1629_v16 = vpop.f32.mrf.mxu0 }
 0xb05   : > { %v2946_v52 = vadd.f32 %v1635_v15, %v2797_v3  ;;  %v1630_v17 = vadd.f32 %v2088_v54, %v1629_v16 }
 0xb07   : > { %v2949_v18 = vadd.f32 %v1630_v17, %v2795_v2  ;;  %v1643_v19 = vsel %vm567_vm1, %v2946_v52, 0.0 }
 0xb08   : > { %1644 = vadd.xlane.f32.xlu1 %v1643_v19 }
 0xb09   : > { %v1640_v20 = vsel %vm567_vm1, %v2949_v18, 0.0 }
 0xb0a   : > { %1641 = vadd.xlane.f32.xlu0 %v1640_v20 }
 0xb91   : > { %v1645_v21 = vpop.xlane.xlu1 %1644 }
 0xb92   : > { %v1647_v22 = vmul.f32 0.03125, %v1645_v21 }
 0xb93   : > { %v1642_v23 = vpop.xlane.xlu0 %1641 }
 0xb94   : > { %v1646_v3 = vmul.f32 0.03125, %v1642_v23  ;;  %v1649_v24 = vsub.f32 %v2946_v52, %v1647_v22 }
 0xb96   : > { %v1648_v2 = vsub.f32 %v2949_v18, %v1646_v3  ;;  %v1651_v28 = vmul.f32 %v1649_v24, %v1649_v24 }
 0xb98   : > { %v1650_v25 = vmul.f32 %v1648_v2, %v1648_v2  ;;  %v1655_v30 = vsel %vm567_vm1, %v1651_v28, 0.0 }
 0xb9a   : > { %v1652_v26 = vsel %vm567_vm1, %v1650_v25, 0.0 }
 0xb9b   : > { %1653 = vadd.xlane.f32.xlu0 %v1652_v26 }
 0xb9f   : > { %1656 = vadd.xlane.f32.xlu0 %v1655_v30 }
 0xc24   : > { %v1654_v38 = vpop.xlane.xlu0 %1653 }
 0xc25   : > { %v1658_v39 = vmul.f32 0.03125, %v1654_v38 }
 0xc27   : > { %v1660_v56 = vadd.f32 1e-05, %v1658_v39 }
 0xc28   : > { %v1657_v40 = vpop.xlane.xlu0 %1656 }
 0xc29   : > { %2394 = vrsqrt.f32 %v1660_v56  ;;  %v1659_v41 = vmul.f32 0.03125, %v1657_v40 }
 0xc2b   : > { %v1661_v42 = vadd.f32 1e-05, %v1659_v41 }
 0xc2d   : > { %2396 = vrsqrt.f32 %v1661_v42 }
 0xc36   : > { %v2395_v47 = vpop.eup %2394 }
 0xc37   : > { %v1664_v48 = vmul.f32 %v2395_v47, %v1648_v2 }
 0xc39   : > { %v1670_v50 = vmul.f32 %v1669_v46, %v1664_v48 }
 0xc3a   : > { %v2397_v51 = vpop.eup %2396 }
 0xc3b   : > { %v1665_v55 = vmul.f32 %v2397_v51, %v1649_v24  ;;  %v1676_v57 = vadd.f32 %v1675_v49, %v1670_v50 }
 0xc3d   : > { %v1671_v58 = vmul.f32 %v1669_v46, %v1665_v55  ;;  %2252 = vmatprep.mubr.msk.f32.mxu1 %vm567_vm1, %v1676_v57 }
 0xc3f   : > { %v1677_v43 = vadd.f32 %v1675_v49, %v1671_v58 }
 0xc41   : > { %2253 = vmatmul.mubr.msk.f32.vlgmr.msra.gmra.mxu1 %vm567_vm1, %v1677_v43 }
 0xd01   : > { %v2254_v62 = vpop.f32.mrf.mxu1 }
 0xd02   : > { %v1767_v63 = vadd.f32 %v2254_v62, %v2091_v61 }
 0xd03   : > { %v1761_v0 = vpop.f32.mrf.mxu1 }
 0xd04   : > { %v1762_v1 = vadd.f32 %v2091_v61, %v1761_v0  ;;  %v1771_v5 = vmax.f32 %v1767_v63, 0.0 }
 0xd06   : > { %v1770_v4 = vmax.f32 %v1762_v1, 0.0 }
 0xd08   : > { %2271 = vmatprep.mubr.msk.f32.mxu0 %vm1787_vm5, %v1770_v4 }
 0xd09   : > { %2272 = vmatmul.mubr.msk.f32.vlgmr.msra.gmra.mxu0 %vm1787_vm5, %v1771_v5 }
 0xdc9   : > { %v2273_v7 = vpop.f32.mrf.mxu0 }
 0xdca   : > { %v1866_v8 = vadd.f32 %v2273_v7, %v2094_v6 }
 0xdcb   : > { %v1860_v9 = vpop.f32.mrf.mxu0 }
 0xdcc   : > { %v1870_v10 = vadd.f32 %v1866_v8, %v2946_v52  ;;  %v1861_v11 = vadd.f32 %v2094_v6, %v1860_v9  ;;  %1876 = sbr.rel (%p2097_p4) target bundleno = 3538 (0xdd2), region = 84 }
 0xdce   : > { %1872 = vst.msk [vmem:[#allocation2 + $0x8] sm:$0xff] %vm567_vm1, %v1870_v10  ;;  %v1869_v12 = vadd.f32 %v1861_v11, %v2949_v18 }
 0xdd0   : > { %1871 = vst.msk [vmem:[#allocation2] sm:$0xff] %vm567_vm1, %v1869_v12 }
 0xdd1   : > { %1877 = vst.msk [vmem:[#allocation9] sm:$0xff] %vm567_vm1, %v1869_v12  ;;  %1878 = vst.msk [vmem:[#allocation9 + $0x8] sm:$0xff] %vm567_vm1, %v1870_v10 }
 0xdd2 PF: > { %p2304_p9 = scmp.eq.s32.totalorder %s2650_s21, 1  ;;  %s2569_s25 = smov [#allocation9]  }
 0xdd3   : > { %s1885_s16 = sshll.u32 %s2569_s25, 4  ;;  %s1886_s16 = int_to_ptr.vmem [resolvable:$true] %s1885_s16 }
 0xdd4   : > { %s2478_s15 = scalar_lea.vmem %s1886_s16, 256  ;;  %p2485_p10 = scmp.lt.s32.totalorder %s1886_s16, %s1886_s16 }
 0xdd5   : > { %p2479_p0 = scmp.ne.s32.totalorder %s1886_s16, %s2478_s15  ;;  %p2486_p11 = scmp.lt.s32.totalorder %s2478_s15, %s2478_s15 }
 0xdd7   : > { %p2480_p2 = pnand %p2479_p0, %p2304_p9  ;;  %p2487_p13 = por %p2486_p11, %p2485_p10 }
 0xdd9   : > { %p2481_p3 = pneg %p2480_p2 }
 0xddb   : > { %p2488_p7 = pnand %p2487_p13, %p2481_p3 }
 0xddd   : > { %2491 = shalt.err (!%p2488_p7)
}
 0xdde   : > { %s2570_s0 = smov 128  }
 0xddf   : > { %2285 = dma.vmem_to_hbm [thread:$0]  (%p2304_p9), %s1886_s16, 256, %s3031_s11, [#allocation5], %s2570_s0, %s2570_s0, %s2566_s5  }
 0xde0   : > { %2531 = dma.done.wait (%p2304_p9), [#allocation5], 256  }
 0xde1   : > { %2533 = vsyncadd (%p2304_p9), [#allocation5], 4294967040 }
 0xde2 PF: > { %s3059_s13 = sld [smem:[#allocation14_spill]]  ;;  %p21_p12 = scmp.ge.s32.totalorder %s2694_s24, 4  }
 0xde3   : > { %s3060_s17 = smov %s2540_s18  ;;  %s3061_s18 = smov %s2544_s19 }
 0xde4   : > { %s3063_s20 = smov %s2694_s24  ;;  %23 = sbr.rel (!%p21_p12) target bundleno = 10 (0xa), region = 140 }
 0xde8   : > { %s3062_s19 = smov %s3059_s13 }
 0xde9   :  { %1901 = vsyncpa [#allocation4], 1 }
 0xdea   :  { %1903 = vsyncpa [#allocation4 + $0x1], 1 }
 0xdeb   :  { %1904 = vsyncpa [#allocation7], 1 }
 0xdec   :  { %1905 = vsyncpa [#allocation5], 1 }
 0xded   :  { %1907 = vsyncpa [#allocation5 + $0x1], 1 }

</bundles_post_ra>
